<compile_context>
chip_gen: v7x
topology: tpu7x:2x2x1
jax: 0.10.0
libtpu: 0.0.40
codegen_flags: <defaults>
</compile_context>

<pallas_src>
import math
from functools import partial

import numpy as np
import jax
import jax.numpy as jnp
from jax import lax
from jax.experimental import pallas as pl
from jax.experimental.pallas import tpu as pltpu


def _make_divisible(v, divisor=8, min_value=None):
    if min_value is None:
        min_value = divisor
    new_v = max(min_value, int(v + divisor / 2) // divisor * divisor)
    if new_v < 0.9 * v:
        new_v += divisor
    return new_v


def _build_kernel(P, tap_starts, res_start, has_proj, use_res):
    """All loop bounds / offsets are static Python ints.

    P          : number of padded-grid positions (output slab lane width)
    tap_starts : K*K static lane offsets into the extended flattened image
    res_start  : lane offset of the (un-extended) padded grid inside the extended image
    """

    def kernel(x_ref, gamma_ref, beta_ref, w1_ref, b1_ref, w2_ref, b2_ref, o_ref):
        # ----- inverse GDN on the (padded+dilated+extended) image, channel-first -----
        # IGDN(0) == 0, so the zero padding / dilation zeros stay zero.
        xe = x_ref[0]                                              # (C_in, P_ext)
        nrm = jnp.dot(gamma_ref[...], xe * xe,
                      preferred_element_type=jnp.float32) + beta_ref[...]
        ye = xe * jnp.sqrt(nrm)                                    # (C_in, P_ext)

        # ----- im2col: stack the K*K lane-shifted views, one deep matmul -----
        patches = jnp.concatenate(
            [ye[:, t0:t0 + P] for t0 in tap_starts], axis=0)       # (K*K*C_in, P)
        acc = jnp.dot(w1_ref[...], patches,
                      preferred_element_type=jnp.float32) + b1_ref[...]   # (C_exp, P)

        # SiLU via tanh identity: sigmoid(a) = 0.5 * (tanh(a/2) + 1)  (EUP, no f32 divide)
        a = acc * (0.5 * (jnp.tanh(0.5 * acc) + 1.0))

        if has_proj:
            out = jnp.dot(w2_ref[...], a,
                          preferred_element_type=jnp.float32) + b2_ref[...]  # (C_out, P)
        else:
            out = a

        if use_res:
            out = out + ye[:, res_start:res_start + P]             # residual adds IGDN output

        o_ref[0] = out.astype(o_ref.dtype)                         # single lane-dense store

    return kernel


def dec_fused_mbconv(x_nchw, params, *, kernel_size, stride, expand_ratio):
    """Wrapper: NCHW in, NCHW out (matching the PyTorch module)."""
    N, C_in, H, W = x_nchw.shape
    gamma, beta, w1_t, b1, w2_t, b2 = params          # ConvTranspose2d weights: (in, out, K, K)
    K = kernel_size
    S = stride
    p = K // 2
    op = S - 1
    pad_lo = K - 1 - p                 # equivalent-regular-conv padding (low side)
    pad_hi = K - 1 - p + op            # high side includes output_padding
    C_exp = w1_t.shape[1]
    has_proj = (C_exp != C_in)
    C_out = w2_t.shape[1] if has_proj else C_exp
    use_res = (S == 1 and C_in == C_out)

    # padded + dilated grid on which the equivalent (flipped-kernel) regular conv runs
    Hd = (H - 1) * S + 1 + pad_lo + pad_hi
    Wd = (W - 1) * S + 1 + pad_lo + pad_hi
    H_out = Hd - K + 1                 # == H * S
    W_out = Wd - K + 1
    P = Hd * Wd

    # flattened tap offsets (centered so output position p sits at padded-grid position p)
    min_off = -pad_lo * (Wd + 1)
    max_off = (K - 1 - pad_lo) * (Wd + 1)
    P_ext = P + (max_off - min_off)
    tap_starts = [((dh - pad_lo) * Wd + (dw - pad_lo)) - min_off
                  for dh in range(K) for dw in range(K)]
    res_start = -min_off

    # ---- glue (pure layout, no transposes): dilate + pad, flatten, extend with zeros ----
    x = x_nchw.astype(jnp.float32)
    xd = lax.pad(x, jnp.float32(0.0),
                 ((0, 0, 0), (0, 0, 0),
                  (pad_lo, pad_hi, S - 1), (pad_lo, pad_hi, S - 1)))   # (N, C, Hd, Wd)
    x_flat = xd.reshape(N, C_in, P)
    x_ext = jnp.pad(x_flat, ((0, 0), (0, 0), (-min_off, max_off)))     # (N, C, P_ext)

    # ---- weight prep (channel-first matmul forms) ----
    gamma_m = gamma.astype(jnp.float32)                                # (C_in, C_in)
    beta_m = beta.reshape(C_in, 1).astype(jnp.float32)
    wf = jnp.flip(w1_t, axis=(2, 3))                                   # spatial flip for convT
    w1_m = jnp.transpose(wf, (1, 2, 3, 0)).reshape(C_exp, K * K * C_in).astype(jnp.float32)
    b1_m = b1.reshape(C_exp, 1).astype(jnp.float32)
    if has_proj:
        w2_m = jnp.transpose(w2_t[:, :, 0, 0]).astype(jnp.float32)     # (C_out, C_exp)
        b2_m = b2.reshape(C_out, 1).astype(jnp.float32)
    else:
        w2_m = jnp.zeros((C_out, C_exp), jnp.float32)                  # unused
        b2_m = jnp.zeros((C_out, 1), jnp.float32)

    kernel = _build_kernel(P, tap_starts, res_start, has_proj, use_res)

    grid_spec = pltpu.PrefetchScalarGridSpec(
        num_scalar_prefetch=0,
        grid=(N,),
        in_specs=[
            pl.BlockSpec((1, C_in, P_ext), lambda n: (n, 0, 0)),       # extended image
            pl.BlockSpec((C_in, C_in), lambda n: (0, 0)),              # gamma
            pl.BlockSpec((C_in, 1), lambda n: (0, 0)),                 # beta
            pl.BlockSpec((C_exp, K * K * C_in), lambda n: (0, 0)),     # conv1 weight (im2col form)
            pl.BlockSpec((C_exp, 1), lambda n: (0, 0)),                # conv1 bias
            pl.BlockSpec((C_out, C_exp), lambda n: (0, 0)),            # conv2 weight
            pl.BlockSpec((C_out, 1), lambda n: (0, 0)),                # conv2 bias
        ],
        out_specs=pl.BlockSpec((1, C_out, P), lambda n: (n, 0, 0)),
    )
    # TODO(synk): for production image sizes, tile the grid over row-blocks with a halo
    # so the per-step block fits v7x's 64 MiB VMEM and gives >N pipeline steps.
    out_flat = pl.pallas_call(
        kernel,
        out_shape=jax.ShapeDtypeStruct((N, C_out, P), jnp.float32),
        grid_spec=grid_spec,
        compiler_params=pltpu.CompilerParams(dimension_semantics=("parallel",)),
    )(x_ext, gamma_m, beta_m, w1_m, b1_m, w2_m, b2_m)

    # output is already NCHW channel order; just drop the conv padding ring
    out_full = out_flat.reshape(N, C_out, Hd, Wd)
    return out_full[:, :, pad_lo:pad_lo + H_out, pad_lo:pad_lo + W_out]


def _reference(x_nchw, params, *, kernel_size, stride, expand_ratio):
    """Pure-JAX reference of the same forward pass (scatter-add conv-transpose)."""
    gamma, beta, w1_t, b1, w2_t, b2 = params
    K = kernel_size
    S = stride
    p = K // 2
    op = S - 1
    N, C_in, H, W = x_nchw.shape
    C_exp = w1_t.shape[1]
    has_proj = (C_exp != C_in)

    x = x_nchw.astype(jnp.float32)
    # inverse GDN
    nrm = jnp.einsum('ij,njhw->nihw', gamma, x * x) + beta.reshape(1, C_in, 1, 1)
    y = x * jnp.sqrt(nrm)
    # ConvTranspose2d(C_in, C_exp, K, S, padding=p, output_padding=op) via scatter-add
    H_out = (H - 1) * S - 2 * p + K + op
    W_out = (W - 1) * S - 2 * p + K + op
    full = jnp.zeros((N, C_exp, (H - 1) * S + K, (W - 1) * S + K), jnp.float32)
    for kh in range(K):
        for kw in range(K):
            contrib = jnp.einsum('nihw,io->nohw', y, w1_t[:, :, kh, kw])
            full = full.at[:, :, kh:kh + (H - 1) * S + 1:S,
                                 kw:kw + (W - 1) * S + 1:S].add(contrib)
    h1 = full[:, :, p:p + H_out, p:p + W_out] + b1.reshape(1, C_exp, 1, 1)
    h1 = h1 * jax.nn.sigmoid(h1)
    if has_proj:
        out = jnp.einsum('nihw,io->nohw', h1, w2_t[:, :, 0, 0]) + b2.reshape(1, -1, 1, 1)
    else:
        out = h1
    if S == 1 and C_in == out.shape[1]:
        out = out + y
    return out


if __name__ == "__main__":
    # Config (FusedMBConvConfig): expand_ratio=4, kernel=3, stride=1, C_in=C_out=8
    # -> expanded_channels = _make_divisible(8*4, 8) = 32, two-layer branch, residual active.
    N, C_in, H, W = 2, 8, 16, 16
    expand_ratio, kernel_size, stride = 4.0, 3, 1
    C_out = C_in
    C_exp = _make_divisible(C_in * expand_ratio, 8)

    key = jax.random.PRNGKey(0)
    k1, k2, k3, k4, k5, kx = jax.random.split(key, 6)

    # IGDN params (effective / reparametrized values; default-style init: gamma ~ 0.1*I, beta ~ 1)
    gamma = 0.1 * jnp.eye(C_in, dtype=jnp.float32) \
            + 0.01 * jnp.abs(jax.random.normal(k1, (C_in, C_in), jnp.float32))
    beta = jnp.ones((C_in,), jnp.float32)
    # ConvTranspose2d weights (PyTorch layout: (in_channels, out_channels, K, K))
    w1 = jax.random.normal(k2, (C_in, C_exp, kernel_size, kernel_size),
                           jnp.float32) * (1.0 / math.sqrt(C_in * kernel_size * kernel_size))
    b1 = 0.01 * jax.random.normal(k3, (C_exp,), jnp.float32)
    w2 = jax.random.normal(k4, (C_exp, C_out, 1, 1), jnp.float32) * (1.0 / math.sqrt(C_exp))
    b2 = 0.01 * jax.random.normal(k5, (C_out,), jnp.float32)
    params = (gamma, beta, w1, b1, w2, b2)

    x = jax.random.normal(kx, (N, C_in, H, W), jnp.float32)              # NCHW input

    run = partial(dec_fused_mbconv, kernel_size=kernel_size, stride=stride,
                  expand_ratio=expand_ratio)
    out = jax.block_until_ready(run(x, params))

    ref = jax.block_until_ready(
        _reference(x, params, kernel_size=kernel_size, stride=stride,
                   expand_ratio=expand_ratio))

    assert out.shape == (N, C_out, H * stride, W * stride), out.shape
    if not np.allclose(np.asarray(out), np.asarray(ref), rtol=2e-4, atol=2e-4):
        raise AssertionError("Pallas kernel output mismatch vs JAX reference")
    print("KERNEL_OK")
</pallas_src>

<mosaic_0001>
module attributes {stable_mosaic.version = 11 : i64} {
  func.func @kernel(%arg0: i32, %arg1: memref<1x8x362xf32, #tpu.memory_space<vmem>>, %arg2: memref<8x8xf32, #tpu.memory_space<vmem>>, %arg3: memref<8x1xf32, #tpu.memory_space<vmem>>, %arg4: memref<32x72xf32, #tpu.memory_space<vmem>>, %arg5: memref<32x1xf32, #tpu.memory_space<vmem>>, %arg6: memref<8x32xf32, #tpu.memory_space<vmem>>, %arg7: memref<8x1xf32, #tpu.memory_space<vmem>>, %arg8: memref<1x8x324xf32, #tpu.memory_space<vmem>>) attributes {dimension_semantics = [#tpu.dimension_semantics<parallel>], iteration_bounds = array<i64: 2>, scalar_prefetch = 0 : i64, scratch_operands = 0 : i64, tpu.core_type = #tpu.core_type<tc>, window_params = [{transform_indices = @transform_0, window_bounds = array<i64: 1, 8, 362>}, {pipeline_mode = #tpu.pipeline_mode<synchronous>, transform_indices = @transform_1, window_bounds = array<i64: 8, 8>}, {pipeline_mode = #tpu.pipeline_mode<synchronous>, transform_indices = @transform_2, window_bounds = array<i64: 8, 1>}, {pipeline_mode = #tpu.pipeline_mode<synchronous>, transform_indices = @transform_3, window_bounds = array<i64: 32, 72>}, {pipeline_mode = #tpu.pipeline_mode<synchronous>, transform_indices = @transform_4, window_bounds = array<i64: 32, 1>}, {pipeline_mode = #tpu.pipeline_mode<synchronous>, transform_indices = @transform_5, window_bounds = array<i64: 8, 32>}, {pipeline_mode = #tpu.pipeline_mode<synchronous>, transform_indices = @transform_6, window_bounds = array<i64: 8, 1>}, {transform_indices = @transform_7, window_bounds = array<i64: 1, 8, 324>}]} {
    %c0 = arith.constant 0 : index
    %c0_0 = arith.constant 0 : index
    %c0_1 = arith.constant 0 : index
    %0 = vector.load %arg1[%c0, %c0_0, %c0_1] : memref<1x8x362xf32, #tpu.memory_space<vmem>>, vector<1x8x362xf32>
    %1 = vector.shape_cast %0 : vector<1x8x362xf32> to vector<8x362xf32>
    %c0_2 = arith.constant 0 : index
    %c0_3 = arith.constant 0 : index
    %2 = vector.load %arg2[%c0_2, %c0_3] : memref<8x8xf32, #tpu.memory_space<vmem>>, vector<8x8xf32>
    %3 = arith.mulf %1, %1 : vector<8x362xf32>
    %cst = arith.constant dense<0.000000e+00> : vector<8x362xf32>
    %4 = tpu.matmul %2, %3, %cst {dimension_numbers = #tpu.dot_dimension_numbers<[1], [0], [0], [1], [0, 0, 1, 1], [], []>} : vector<8x8xf32>, vector<8x362xf32>, vector<8x362xf32> -> vector<8x362xf32>
    %c0_4 = arith.constant 0 : index
    %c0_5 = arith.constant 0 : index
    %5 = vector.load %arg3[%c0_4, %c0_5] : memref<8x1xf32, #tpu.memory_space<vmem>>, vector<8x1xf32>
    %6 = vector.broadcast %5 : vector<8x1xf32> to vector<8x362xf32>
    %7 = arith.addf %4, %6 : vector<8x362xf32>
    %8 = math.sqrt %7 : vector<8x362xf32>
    %9 = arith.mulf %1, %8 : vector<8x362xf32>
    %10 = vector.extract_strided_slice %9 {offsets = [0, 0], sizes = [8, 324], strides = [1, 1]} : vector<8x362xf32> to vector<8x324xf32>
    %11 = vector.extract_strided_slice %9 {offsets = [0, 1], sizes = [8, 324], strides = [1, 1]} : vector<8x362xf32> to vector<8x324xf32>
    %12 = vector.extract_strided_slice %9 {offsets = [0, 2], sizes = [8, 324], strides = [1, 1]} : vector<8x362xf32> to vector<8x324xf32>
    %13 = vector.extract_strided_slice %9 {offsets = [0, 18], sizes = [8, 324], strides = [1, 1]} : vector<8x362xf32> to vector<8x324xf32>
    %14 = vector.extract_strided_slice %9 {offsets = [0, 19], sizes = [8, 324], strides = [1, 1]} : vector<8x362xf32> to vector<8x324xf32>
    %15 = vector.extract_strided_slice %9 {offsets = [0, 20], sizes = [8, 324], strides = [1, 1]} : vector<8x362xf32> to vector<8x324xf32>
    %16 = vector.extract_strided_slice %9 {offsets = [0, 36], sizes = [8, 324], strides = [1, 1]} : vector<8x362xf32> to vector<8x324xf32>
    %17 = vector.extract_strided_slice %9 {offsets = [0, 37], sizes = [8, 324], strides = [1, 1]} : vector<8x362xf32> to vector<8x324xf32>
    %18 = vector.extract_strided_slice %9 {offsets = [0, 38], sizes = [8, 324], strides = [1, 1]} : vector<8x362xf32> to vector<8x324xf32>
    %19 = tpu.concatenate %10, %11, %12, %13, %14, %15, %16, %17, %18 in 0 : vector<8x324xf32>, vector<8x324xf32>, vector<8x324xf32>, vector<8x324xf32>, vector<8x324xf32>, vector<8x324xf32>, vector<8x324xf32>, vector<8x324xf32>, vector<8x324xf32> -> vector<72x324xf32>
    %c0_6 = arith.constant 0 : index
    %c0_7 = arith.constant 0 : index
    %20 = vector.load %arg4[%c0_6, %c0_7] : memref<32x72xf32, #tpu.memory_space<vmem>>, vector<32x72xf32>
    %cst_8 = arith.constant dense<0.000000e+00> : vector<32x324xf32>
    %21 = tpu.matmul %20, %19, %cst_8 {dimension_numbers = #tpu.dot_dimension_numbers<[1], [0], [0], [1], [0, 0, 1, 1], [], []>} : vector<32x72xf32>, vector<72x324xf32>, vector<32x324xf32> -> vector<32x324xf32>
    %c0_9 = arith.constant 0 : index
    %c0_10 = arith.constant 0 : index
    %22 = vector.load %arg5[%c0_9, %c0_10] : memref<32x1xf32, #tpu.memory_space<vmem>>, vector<32x1xf32>
    %23 = vector.broadcast %22 : vector<32x1xf32> to vector<32x324xf32>
    %24 = arith.addf %21, %23 : vector<32x324xf32>
    %cst_11 = arith.constant 5.000000e-01 : f32
    %25 = vector.broadcast %cst_11 : f32 to vector<32x324xf32>
    %26 = arith.mulf %25, %24 : vector<32x324xf32>
    %27 = math.tanh %26 : vector<32x324xf32>
    %cst_12 = arith.constant 1.000000e+00 : f32
    %28 = vector.broadcast %cst_12 : f32 to vector<32x324xf32>
    %29 = arith.addf %27, %28 : vector<32x324xf32>
    %cst_13 = arith.constant 5.000000e-01 : f32
    %30 = vector.broadcast %cst_13 : f32 to vector<32x324xf32>
    %31 = arith.mulf %30, %29 : vector<32x324xf32>
    %32 = arith.mulf %24, %31 : vector<32x324xf32>
    %c0_14 = arith.constant 0 : index
    %c0_15 = arith.constant 0 : index
    %33 = vector.load %arg6[%c0_14, %c0_15] : memref<8x32xf32, #tpu.memory_space<vmem>>, vector<8x32xf32>
    %cst_16 = arith.constant dense<0.000000e+00> : vector<8x324xf32>
    %34 = tpu.matmul %33, %32, %cst_16 {dimension_numbers = #tpu.dot_dimension_numbers<[1], [0], [0], [1], [0, 0, 1, 1], [], []>} : vector<8x32xf32>, vector<32x324xf32>, vector<8x324xf32> -> vector<8x324xf32>
    %c0_17 = arith.constant 0 : index
    %c0_18 = arith.constant 0 : index
    %35 = vector.load %arg7[%c0_17, %c0_18] : memref<8x1xf32, #tpu.memory_space<vmem>>, vector<8x1xf32>
    %36 = vector.broadcast %35 : vector<8x1xf32> to vector<8x324xf32>
    %37 = arith.addf %34, %36 : vector<8x324xf32>
    %38 = vector.extract_strided_slice %9 {offsets = [0, 19], sizes = [8, 324], strides = [1, 1]} : vector<8x362xf32> to vector<8x324xf32>
    %39 = arith.addf %37, %38 : vector<8x324xf32>
    %c0_19 = arith.constant 0 : index
    %c0_20 = arith.constant 0 : index
    %c0_21 = arith.constant 0 : index
    %40 = vector.load %arg8[%c0_19, %c0_20, %c0_21] : memref<1x8x324xf32, #tpu.memory_space<vmem>>, vector<1x8x324xf32>
    %41 = vector.shape_cast %40 : vector<1x8x324xf32> to vector<8x324xf32>
    %42 = vector.shape_cast %39 : vector<8x324xf32> to vector<1x8x324xf32>
    tpu.vector_store %arg8[%c0_19, %c0_20, %c0_21], %42 {strides = array<i32>} : memref<1x8x324xf32, #tpu.memory_space<vmem>>, vector<1x8x324xf32>,
    return
  }
  func.func @transform_0(%arg0: i32) -> (i32, i32, i32) {
    %c0_i32 = arith.constant 0 : i32
    %c0_i32_0 = arith.constant 0 : i32
    %c0_i32_1 = arith.constant 0 : i32
    return %arg0, %c0_i32, %c0_i32_0 : i32, i32, i32
  }
  func.func @transform_1(%arg0: i32) -> (i32, i32) {
    %c0_i32 = arith.constant 0 : i32
    %c0_i32_0 = arith.constant 0 : i32
    %c0_i32_1 = arith.constant 0 : i32
    return %c0_i32, %c0_i32_0 : i32, i32
  }
  func.func @transform_2(%arg0: i32) -> (i32, i32) {
    %c0_i32 = arith.constant 0 : i32
    %c0_i32_0 = arith.constant 0 : i32
    %c0_i32_1 = arith.constant 0 : i32
    return %c0_i32, %c0_i32_0 : i32, i32
  }
  func.func @transform_3(%arg0: i32) -> (i32, i32) {
    %c0_i32 = arith.constant 0 : i32
    %c0_i32_0 = arith.constant 0 : i32
    %c0_i32_1 = arith.constant 0 : i32
    return %c0_i32, %c0_i32_0 : i32, i32
  }
  func.func @transform_4(%arg0: i32) -> (i32, i32) {
    %c0_i32 = arith.constant 0 : i32
    %c0_i32_0 = arith.constant 0 : i32
    %c0_i32_1 = arith.constant 0 : i32
    return %c0_i32, %c0_i32_0 : i32, i32
  }
  func.func @transform_5(%arg0: i32) -> (i32, i32) {
    %c0_i32 = arith.constant 0 : i32
    %c0_i32_0 = arith.constant 0 : i32
    %c0_i32_1 = arith.constant 0 : i32
    return %c0_i32, %c0_i32_0 : i32, i32
  }
  func.func @transform_6(%arg0: i32) -> (i32, i32) {
    %c0_i32 = arith.constant 0 : i32
    %c0_i32_0 = arith.constant 0 : i32
    %c0_i32_1 = arith.constant 0 : i32
    return %c0_i32, %c0_i32_0 : i32, i32
  }
  func.func @transform_7(%arg0: i32) -> (i32, i32, i32) {
    %c0_i32 = arith.constant 0 : i32
    %c0_i32_0 = arith.constant 0 : i32
    %c0_i32_1 = arith.constant 0 : i32
    return %arg0, %c0_i32, %c0_i32_0 : i32, i32, i32
  }
}

</mosaic_0001>

<bundles_post_ra>
// kernel: tpu_custom_call.1
= control target key start
LH: loop header
LB: loop body
LE: loop exit
PB: predicated region body
PF: predicated region fallthrough
CT: control target
= control target key end

     0   :  { %12 = vsyncpa [#allocation3], 0  ;;  %s1845_s0 = inlined_call_operand.vmem [shape: f32[2,8,362], index: 0, kind: input, shape index: {}]   ;;  %s1846_s1 = inlined_call_operand.hbm [shape: f32[8,8], index: 1, kind: input, shape index: {}]   ;;  %s1847_s2 = inlined_call_operand.vmem [shape: f32[8,1], index: 2, kind: input, shape index: {}]   ;;  %s1848_s3 = inlined_call_operand.hbm [shape: f32[32,72], index: 3, kind: input, shape index: {}]   ;;  %s1849_s4 = inlined_call_operand.vmem [shape: f32[32,1], index: 4, kind: input, shape index: {}]   ;;  %s1850_s5 = inlined_call_operand.vmem [shape: f32[8,32], index: 5, kind: input, shape index: {}]   ;;  %s1851_s6 = inlined_call_operand.vmem [shape: f32[8,1], index: 6, kind: input, shape index: {}]   ;;  %s1852_s7 = inlined_call_operand.hbm [shape: f32[2,8,324], index: 7, kind: output, shape index: {}]  }
   0x1   :  { %13 = vsyncpa [#allocation6], 0 }
   0x2   :  { %14 = vsyncpa [#allocation4], 0 }
   0x3   :  { %16 = vsyncpa [#allocation4 + $0x1], 0  ;;  %s1570_s24 = smov 0   ;;  %s1572_s25 = smov 0  }
   0x4   :  { %s1574_s26 = smov 0   ;;  %s1576_s27 = smov 0  }
   0x5 LB: > { %s1591_s28 = sadd.s32 4294967295, %s1511_s27   ;;  %s1116_s29 = sadd.s32 4294967294, %s1511_s27   ;;  %s1511_s27 = sphi %s1576_s27, %s1870_s27   ;;  %s1507_s26 = sphi %s1574_s26, %s1869_s26   ;;  %s1503_s25 = sphi %s1572_s25, %s1868_s25   ;;  %s1499_s24 = sphi %s1570_s24, %s1867_s24  }
   0x6   : > { %s1595_s30 = sadd.s32 1, %s1511_s27   ;;  %s181_s8 = sadd.s32 1, %s1507_s26 }
   0x7   : > { %s178_s9 = ssub.s32 %s1511_s27, %s1595_s30  ;;  %p191_p0 = scmp.ne.s32.totalorder %s1507_s26, %s1503_s25 }
   0x8   : > { %p179_p1 = scmp.eq.s32.totalorder %s178_s9, 0  ;;  %p192_p2 = scmp.eq.s32.totalorder %s1591_s28, 1 }
   0x9   : > { %p197_p3 = scmp.ne.s32.totalorder %s1503_s25, %s1499_s24  ;;  %p198_p4 = scmp.eq.s32.totalorder %s1116_s29, 1 }
   0xa   : > { %s1606_s10 = scalar_select %p179_p1, %s1507_s26, %s181_s8  }
   0xb   : > { %p1608_p5 = por %p192_p2, %p191_p0  ;;  %p1612_p6 = por %p198_p4, %p197_p3 }
   0xc   : > { %p1117_p7 = scmp.ge.s32.totalorder %s1511_s27, 1  ;;  %p205_p8 = scmp.lt.s32.totalorder %s1511_s27, 3 }
   0xd   : > { %s1856_s11 = scalar_select %p1608_p5, 1, 0 }
   0xe   : > { %s1857_s12 = scalar_select %p1612_p6, 1, 0 }
   0xf   : > { %p1853_p9 = scmp.eq.s32.totalorder %s1591_s28, 0  ;;  %p1619_p10 = pnand %p1117_p7, %p205_p8 }
  0x10   : > { %s1513_s14 = smov [#allocation2]   ;;  %s1514_s16 = smov [#allocation5]  }
  0x11   : > { %s1858_s13 = scalar_select %p1619_p10, 1, 0 }
  0x12   : > { %s218_s15 = sshll.u32 %s1513_s14, 4  ;;  %p1259_p11 = pneg %p1619_p10  ;;  %s219_s15 = int_to_ptr.vmem [resolvable:$true] %s218_s15 }
  0x13   : > { %s231_s17 = sshll.u32 %s1514_s16, 4  ;;  %s1385_s21 = scalar_lea.hbm %s1846_s1, 128  ;;  %s1631_s17 = int_to_ptr.vmem [resolvable:$true] %s231_s17 }
  0x14   : > { %p1627_p12 = pnand %p1853_p9, %p1259_p11  ;;  %p1386_p13 = scmp.ne.s32.totalorder %s1846_s1, %s1385_s21 }
  0x15   : > { %p1392_p3 = scmp.lt.u32.totalorder %s1385_s21, %s1846_s1 }
  0x16   : > { %p1387_p0 = pneg %p1627_p12 }
  0x18   : > { %p1388_p1 = pnand %p1387_p0, %p1386_p13 }
  0x1a   : > { %p1389_p2 = pneg %p1388_p1 }
  0x1c   : > { %p1394_p4 = pnand %p1392_p3, %p1389_p2 }
  0x1e   : > { %1397 = shalt.err (!%p1394_p4)
}
  0x1f   : > { %s1398_s9 = scalar_lea.vmem %s219_s15, 128  ;;  %p1406_p9 = scmp.lt.s32.totalorder %s219_s15, %s219_s15 }
  0x20   : > { %p1399_p7 = scmp.ne.s32.totalorder %s219_s15, %s1398_s9  ;;  %p1407_p6 = scmp.lt.s32.totalorder %s1398_s9, %s1398_s9 }
  0x22   : > { %p1401_p8 = pnand %p1399_p7, %p1387_p0  ;;  %p1408_p5 = por %p1407_p6, %p1406_p9 }
  0x24   : > { %p1402_p11 = pneg %p1401_p8 }
  0x26   : > { %p1409_p10 = pnand %p1408_p5, %p1402_p11 }
  0x28   : > { %1412 = shalt.err (!%p1409_p10)
}
  0x29   : > { %1262 = dma.hbm_to_vmem [thread:$0]  (!%p1627_p12), %s1846_s1, 128, %s219_s15, [#allocation3]  }
  0x2a   : > { %s1413_s21 = scalar_lea.hbm %s1848_s3, 512 }
  0x2b   : > { %p1414_p13 = scmp.ne.s32.totalorder %s1848_s3, %s1413_s21  ;;  %p1420_p9 = scmp.lt.u32.totalorder %s1413_s21, %s1848_s3 }
  0x2d   : > { %p1416_p6 = pnand %p1414_p13, %p1387_p0 }
  0x2f   : > { %p1417_p5 = pneg %p1416_p6 }
  0x31   : > { %p1422_p10 = pnand %p1420_p9, %p1417_p5 }
  0x33   : > { %1425 = shalt.err (!%p1422_p10)
}
  0x34   : > { %s1426_s15 = scalar_lea.vmem %s1631_s17, 512  ;;  %p1434_p4 = scmp.lt.s32.totalorder %s1631_s17, %s1631_s17 }
  0x35   : > { %p1427_p1 = scmp.ne.s32.totalorder %s1631_s17, %s1426_s15  ;;  %p1435_p7 = scmp.lt.s32.totalorder %s1426_s15, %s1426_s15 }
  0x37   : > { %p1429_p2 = pnand %p1427_p1, %p1387_p0  ;;  %p1436_p8 = por %p1435_p7, %p1434_p4 }
  0x39   : > { %p1430_p3 = pneg %p1429_p2 }
  0x3b   : > { %p1437_p11 = pnand %p1436_p8, %p1430_p3 }
  0x3d   : > { %1440 = shalt.err (!%p1437_p11)
}
  0x3e   : > { %s1515_s9 = smov 128   ;;  %s1516_s14 = smov 8  }
  0x3f   : > { %1265 = dma.hbm_to_vmem [thread:$0]  (!%p1627_p12), %s1848_s3, 512, %s1631_s17, [#allocation6], %s1515_s9, %s1515_s9, %s1516_s14  }
  0x40   : > { %p1860_p13 = scmp.ne.s32.totalorder %s1858_s13, 0 }
  0x41   : > { %p1861_p0 = scmp.eq.s32.totalorder (!%p1860_p13), %s1591_s28, 0 }
  0x42   : > { %264 = sbr.rel (%p1860_p13) target bundleno = 954 (0x3ba), region = 48 }
  0x49   : > { %1486 = dma.done.wait (%p1861_p0), [#allocation3], 128   ;;  %p1862_p6 = pmov %p1861_p0 }
  0x4a   : > { %p1863_p5 = pmov %p1861_p0 }
  0x4b   : > { %1488 = vsyncadd (%p1862_p6), [#allocation3], 4294967168 }
  0x4c   : > { %1490 = dma.done.wait (%p1863_p5), [#allocation6], 512   ;;  %p1864_p9 = pmov %p1861_p0 }
  0x4d   : > { %p300_p10 = scmp.lt.s32.totalorder %s1591_s28, 1  ;;  %v1517_v0 = vmov 0.0   ;;  %v1518_v1 = vmov 0   ;;  %v312_v7 = vld [vmem:[%s1847_s2] sm:$0xff]  ;;  %vm318_vm0 = vcmask 64512   ;;  %vm1519_vm1 = vmmov 0  }
  0x4e   : > { %1492 = vsyncadd (%p1864_p9), [#allocation6], 4294966784  ;;  %386 = vmatprep.mubr.f32.mxu1 %v1517_v0  ;;  %691 = vmatprep.mubr.f32.mxu0 %v1517_v0  ;;  %v308_v9 = vld [vmem:[#allocation2] sm:$0xff]  ;;  %s1520_s29 = smov 110   ;;  %s1521_s8 = smov 127   ;;  %v1711_v37 = vld [vmem:[#allocation5] sm:$0xff] }
  0x4f   : > { %s301_s13 = scalar_select %p300_p10, %s1591_s28, 1  ;;  %1323 = vset.pattern.permute.xlu0 %v1518_v1  ;;  %1354 = vset.pattern.permute.xlu1 %v1518_v1  ;;  %vm614_vm8 = vcmask 588800   ;;  %v591_v38 = vld [vmem:[%s1849_s4 + $0x8] sm:$0xff]  ;;  %v593_v39 = vld [vmem:[%s1849_s4 + $0x18] sm:$0xff]  ;;  %v590_v40 = vld [vmem:[%s1849_s4] sm:$0xff]  ;;  %vm496_vm9 = vcmask 1039360  }
  0x50   : > { %315 = vperm.xlu0 %1323, %v312_v7   ;;  %s1522_s15 = smov 109   ;;  %s1523_s9 = smov 126   ;;  %v592_v41 = vld [vmem:[%s1849_s4 + $0x10] sm:$0xff]  ;;  %v862_v42 = vld [vmem:[%s1851_s6] sm:$0xff]  ;;  %vm508_vm10 = vcmask 1031168   ;;  %vm520_vm11 = vcmask 900096  }
  0x51   : > { %s1247_s17 = smul.u32 24, %s301_s13  ;;  %s1524_s14 = smov 92   ;;  %vm532_vm12 = vcmask 891904   ;;  %vm544_vm13 = vcmask 883712   ;;  %vm556_vm14 = vcmask 752640   ;;  %vm568_vm15 = vcmask 744448  }
  0x52   : > { %s1525_s16 = smov 108   ;;  %s1526_s19 = smov 91  }
  0x53   : > { %s304_s21 = scalar_lea.vmem %s1845_s0, %s1247_s17  ;;  %s1527_s13 = smov 90  }
  0x54   : > { %v306_v2 = vld [vmem:[%s304_s21 + $0x8] sm:$0xff]  ;;  %v307_v3 = vld [vmem:[%s304_s21 + $0x10] sm:$0xff]  ;;  %v305_v4 = vld [vmem:[%s304_s21] sm:$0xff]  ;;  %s1248_s18 = smul.u32 384, %s1591_s28  ;;  %p1865_p1 = scmp.ne.s32.totalorder %s1856_s11, 0 }
  0x55   : > { %v310_v5 = vmul.f32 %v306_v2, %v306_v2  ;;  %v309_v6 = vmul.f32 %v305_v4, %v305_v4  ;;  %v311_v8 = vmul.f32 %v307_v3, %v307_v3 }
  0x56   : > { %s1803_s23 = scalar_lea.hbm %s1852_s7, %s1248_s18 }
  0x57   : > { %322 = vmatprep.subr.mxu1 %v310_v5 }
  0x58   : > { %323 = vmatpush1.msra.mxu1 %v309_v6 }
  0x59   : > { %1125 = vmatmul.mubr.msk.f32.vlgmr.msra.gmra.mrb[0].mxu1 %vm318_vm0, %v308_v9  ;;  %1160 = vmatprep.subr.mxu1 %v1517_v0 }
  0x5a   : > { %1161 = vmatpush3.msra.mxu1 %v311_v8  ;;  %1162 = vmatprep.mubr.msk.f32.mxu1 %vm1519_vm1, %v1517_v0 }
  0x5d   : > { %1163 = vmatmul.mubr.msk.f32.vlgmr.msra.gmra.mrb[2].mxu1 %vm318_vm0, %v308_v9  ;;  %vm580_vm0 = vcmask 736256  }
  0x5e   : > { %1183 = vmatprep.mubr.msk.f32.mxu1 %vm614_vm8, %v1711_v37 }
  0xcf   : > { %v316_v10 = vpop.permute.xlu0 %315 }
 0x12c   : > { %v388_v11 = vpop.f32.mrb[0].mxu1 }
 0x12d   : > { %v389_v12 = vadd.f32 %v388_v11, %v316_v10  ;;  %v390_v13 = vpop.f32.mrb[1].mxu1 }
 0x12e   : > { %v391_v14 = vadd.f32 %v390_v13, %v316_v10 }
 0x12f   : > { %1355 = vrsqrt.f32 %v389_v12  ;;  %vm465_vm2 = vcmp.eq.f32.partialorder %v389_v12, inf  ;;  %v468_v21 = vand.u32 2147483648, %v389_v12  ;;  %vm467_vm3 = vcmp.eq.f32.partialorder %v389_v12, 0.0 }
 0x130   : > { %v459_v15 = vpop.f32.mrb[2].mxu1  ;;  %1357 = vrsqrt.f32 %v391_v14  ;;  %vm472_vm5 = vcmp.eq.f32.partialorder %v391_v14, inf  ;;  %v475_v31 = vand.u32 2147483648, %v391_v14  ;;  %vm474_vm7 = vcmp.eq.f32.partialorder %v391_v14, 0.0 }
 0x131   : > { %v460_v16 = vadd.f32 %v459_v15, %v316_v10  ;;  %v1164_v17 = vpop.f32.mrb[3].mxu1 }
 0x133   : > { %1359 = vrsqrt.f32 %v460_v16  ;;  %vm479_vm4 = vcmp.eq.f32.partialorder %v460_v16, inf  ;;  %v482_v29 = vand.u32 2147483648, %v460_v16  ;;  %vm481_vm6 = vcmp.eq.f32.partialorder %v460_v16, 0.0 }
 0x139   : > { %v1356_v18 = vpop.eup %1355 }
 0x13a   : > { %v464_v19 = vmul.f32 %v1356_v18, %v389_v12  ;;  %v1358_v20 = vpop.eup %1357 }
 0x13b   : > { %v471_v26 = vmul.f32 %v1358_v20, %v391_v14 }
 0x13c   : > { %v466_v22 = vsel %vm465_vm2, %v389_v12, %v464_v19  ;;  %vm1018_vm2 = vcmask 556032  }
 0x13d   : > { %v1360_v23 = vpop.eup %1359  ;;  %v469_v24 = vsel %vm467_vm3, %v468_v21, %v466_v22  ;;  %v473_v30 = vsel %vm472_vm5, %v391_v14, %v471_v26 }
 0x13e   : > { %v1703_v25 = vmul.f32 %v469_v24, %v305_v4  ;;  %v478_v27 = vmul.f32 %v1360_v23, %v460_v16  ;;  %v476_v33 = vsel %vm474_vm7, %v475_v31, %v473_v30 }
 0x13f   : > { %v485_v35 = vmul.f32 %v476_v33, %v306_v2 }
 0x140   : > { %v480_v28 = vsel %vm479_vm4, %v460_v16, %v478_v27  ;;  %514 = vrot.lane.b32.xlu0 %v1703_v25, %s1520_s29  ;;  %490 = vrot.lane.b32.xlu1 %v1703_v25, %s1521_s8 }
 0x141   : > { %v483_v32 = vsel %vm481_vm6, %v482_v29, %v480_v28 }
 0x142   : > { %v486_v34 = vmul.f32 %v483_v32, %v307_v3 }
 0x144   : > { %526 = vrot.lane.b32.xlu0 %v1703_v25, %s1522_s15  ;;  %502 = vrot.lane.b32.xlu1 %v1703_v25, %s1523_s9  ;;  %v1324_v36 = vpack.i.bf16 %v486_v34, %v485_v35 }
 0x148   : > { %550 = vrot.lane.b32.xlu0 %v1703_v25, %s1524_s14  ;;  %538 = vrot.lane.b32.xlu1 %v1703_v25, %s1525_s16 }
 0x14c   : > { %1325 = vrot.lane.b32.xlu0 %v1324_v36, %s1521_s8  ;;  %528 = vrot.lane.b32.xlu1 %v485_v35, %s1522_s15  ;;  %s1529_s8 = smov [#allocation7]  }
 0x150   : > { %1335 = vrot.lane.b32.xlu0 %v1324_v36, %s1520_s29  ;;  %1330 = vrot.lane.b32.xlu1 %v1324_v36, %s1523_s9 }
 0x154   : > { %530 = vrot.lane.b32.xlu0 %v486_v34, %s1522_s15  ;;  %1340 = vrot.lane.b32.xlu1 %v1324_v36, %s1525_s16  ;;  %s1445_s15 = sshll.u32 %s1529_s8, 4  ;;  %s1446_s15 = int_to_ptr.vmem [resolvable:$false] %s1445_s15 }
 0x155   : > { %s1447_s9 = scalar_lea.vmem %s1446_s15, 768 }
 0x158   : > { %1345 = vrot.lane.b32.xlu0 %v1324_v36, %s1524_s14  ;;  %1350 = vrot.lane.b32.xlu1 %v1324_v36, %s1526_s19  ;;  %v587_v36 = vld [vmem:[#allocation5 + $0x8] sm:$0xff] }
 0x15c   : > { %576 = vrot.lane.b32.xlu0 %v485_v35, %s1527_s13  ;;  %562 = vrot.lane.b32.xlu1 %v1703_v25, %s1526_s19  ;;  %s297_s19 = sand.u32 1, %s1503_s25  }
 0x15d   : > { %s1021_s28 = scalar_lea.sflag [#allocation4], %s297_s19 }
 0x160   : > { %574 = vrot.lane.b32.xlu0 %v1703_v25, %s1527_s13  ;;  %578 = vrot.lane.b32.xlu1 %v486_v34, %s1527_s13  ;;  %s1246_s13 = smul.u32 24, %s297_s19 }
 0x162   : > { %s299_s17 = scalar_lea.vmem [#allocation7], %s1246_s13 }
 0x163   : > { %s1035_s20 = sshll.u32 %s299_s17, 4  ;;  %s1805_s20 = int_to_ptr.vmem [resolvable:$true] %s1035_s20 }
 0x164   : > { %601 = vperm.xlu0 %1323, %v591_v38   ;;  %596 = vperm.xlu1 %1354, %v590_v40   ;;  %s1441_s29 = scalar_lea.vmem %s1805_s20, 384  ;;  %p1448_p4 = scmp.lt.s32.totalorder %s1805_s20, %s1446_s15 }
 0x165   : > { %p1442_p12 = scmp.ne.s32.totalorder %s1805_s20, %s1441_s29  ;;  %p1449_p7 = scmp.lt.s32.totalorder %s1447_s9, %s1441_s29 }
 0x167   : > { %p1443_p2 = pnand %p1442_p12, %p1865_p1  ;;  %p1450_p8 = por %p1449_p7, %p1448_p4 }
 0x168   : > { %611 = vperm.xlu0 %1323, %v593_v39   ;;  %606 = vperm.xlu1 %1354, %v592_v41   ;;  %v588_v39 = vld [vmem:[#allocation5 + $0x10] sm:$0xff]  ;;  %v589_v41 = vld [vmem:[#allocation5 + $0x18] sm:$0xff] }
 0x169   : > { %p1444_p3 = pneg %p1443_p2 }
 0x16b   : > { %p1451_p11 = pnand %p1450_p8, %p1444_p3 }
 0x16c   : > { %865 = vperm.xlu1 %1354, %v862_v42  }
 0x1b2   : > { %v515_v43 = vpop.permute.xlu0 %514  ;;  %v491_v44 = vpop.permute.xlu1 %490 }
 0x1b6   : > { %v527_v45 = vpop.permute.xlu0 %526  ;;  %v503_v46 = vpop.permute.xlu1 %502 }
 0x1ba   : > { %v1732_v47 = vpop.permute.xlu0 %550  ;;  %v539_v48 = vpop.permute.xlu1 %538 }
 0x1be   : > { %v1326_v49 = vpop.permute.xlu0 %1325  ;;  %v529_v50 = vpop.permute.xlu1 %528 }
 0x1bf   : > { %v1328_v51 = vunpack.i.h.bf16 %v1326_v49  ;;  %v1327_v52 = vunpack.i.l.bf16 %v1326_v49  ;;  %v1740_v12 = vsel %vm532_vm12, %v527_v45, %v529_v50 }
 0x1c1   : > { %v1216_v53 = vpack.c.bf16 %v1328_v51, %v486_v34  ;;  %v498_v54 = vsel %vm496_vm9, %v1327_v52, %v1328_v51  ;;  %v497_v55 = vsel %vm496_vm9, %v491_v44, %v1327_v52 }
 0x1c2   : > { %v1336_v56 = vpop.permute.xlu0 %1335  ;;  %v1331_v57 = vpop.permute.xlu1 %1330  ;;  %v1200_v58 = vpack.c.bf16 %v498_v54, %v485_v35  ;;  %v1202_v59 = vpack.c.bf16 %v497_v55, %v1703_v25 }
 0x1c3   : > { %v1338_v60 = vunpack.i.h.bf16 %v1336_v56  ;;  %v1337_v61 = vunpack.i.l.bf16 %v1336_v56  ;;  %v1333_v62 = vunpack.i.h.bf16 %v1331_v57  ;;  %v1332_v63 = vunpack.i.l.bf16 %v1331_v57  ;;  %1217 = vmatprep.subr.bf16.mxu1 %v1216_v53 }
 0x1c4   : > { %1201 = vmatprep.subr.bf16.mxu0 %v1200_v58  ;;  %1219 = vmatpush3.bf16.msra.mxu1 %v1216_v53 }
 0x1c5   : > { %v1220_v1 = vpack.c.bf16 %v1338_v60, %v1333_v62  ;;  %1203 = vmatpush1.bf16.msra.mxu0 %v1202_v59  ;;  %v510_v2 = vsel %vm508_vm10, %v1332_v63, %v1333_v62  ;;  %v522_v3 = vsel %vm520_vm11, %v1337_v61, %v1338_v60  ;;  %v509_v4 = vsel %vm508_vm10, %v503_v46, %v1332_v63 }
 0x1c6   : > { %v1736_v5 = vpop.permute.xlu0 %530  ;;  %v1341_v6 = vpop.permute.xlu1 %1340  ;;  %v1204_v7 = vpack.c.bf16 %v522_v3, %v510_v2  ;;  %v521_v8 = vsel %vm520_vm11, %v515_v43, %v1337_v61 }
 0x1c7   : > { %v1343_v9 = vunpack.i.h.bf16 %v1341_v6  ;;  %v1342_v10 = vunpack.i.l.bf16 %v1341_v6  ;;  %1221 = vmatprep.subr.bf16.mxu1 %v1220_v1  ;;  %v1206_v11 = vpack.c.bf16 %v521_v8, %v509_v4  ;;  %v1744_v13 = vsel %vm532_vm12, %v529_v50, %v1736_v5 }
 0x1c8   : > { %1205 = vmatprep.subr.bf16.mxu0 %v1204_v7  ;;  %1223 = vmatpush3.bf16.msra.mxu1 %v1220_v1 }
 0x1c9   : > { %v1224_v14 = vpack.c.bf16 %v1343_v9, %v1736_v5  ;;  %1207 = vmatpush1.bf16.msra.mxu0 %v1206_v11  ;;  %v546_v15 = vsel %vm544_vm13, %v1342_v10, %v1343_v9  ;;  %v545_v16 = vsel %vm544_vm13, %v539_v48, %v1342_v10 }
 0x1ca   : > { %v1346_v17 = vpop.permute.xlu0 %1345  ;;  %v1351_v18 = vpop.permute.xlu1 %1350  ;;  %v1208_v19 = vpack.c.bf16 %v546_v15, %v1744_v13  ;;  %v1210_v20 = vpack.c.bf16 %v545_v16, %v1740_v12 }
 0x1cb   : > { %v1348_v21 = vunpack.i.h.bf16 %v1346_v17  ;;  %v1347_v22 = vunpack.i.l.bf16 %v1346_v17  ;;  %v1353_v23 = vunpack.i.h.bf16 %v1351_v18  ;;  %v1352_v24 = vunpack.i.l.bf16 %v1351_v18  ;;  %1225 = vmatprep.subr.bf16.mxu1 %v1224_v14 }
 0x1cc   : > { %1209 = vmatprep.subr.bf16.mxu0 %v1208_v19  ;;  %1227 = vmatpush3.bf16.msra.mxu1 %v1224_v14 }
 0x1cd   : > { %v1228_v25 = vpack.c.bf16 %v1353_v23, %v1348_v21  ;;  %1211 = vmatpush1.bf16.msra.mxu0 %v1210_v20  ;;  %v558_v26 = vsel %vm556_vm14, %v1347_v22, %v1348_v21  ;;  %v570_v27 = vsel %vm568_vm15, %v1352_v24, %v1353_v23  ;;  %v557_v31 = vsel %vm556_vm14, %v1732_v47, %v1347_v22 }
 0x1ce   : > { %v577_v28 = vpop.permute.xlu0 %576  ;;  %v563_v29 = vpop.permute.xlu1 %562  ;;  %v1212_v30 = vpack.c.bf16 %v570_v27, %v558_v26 }
 0x1cf   : > { %v569_v32 = vsel %vm568_vm15, %v563_v29, %v1352_v24  ;;  %1229 = vmatprep.subr.bf16.mxu1 %v1228_v25 }
 0x1d0   : > { %v1214_v33 = vpack.c.bf16 %v569_v32, %v557_v31  ;;  %1213 = vmatprep.subr.bf16.mxu0 %v1212_v30  ;;  %1231 = vmatpush3.bf16.msra.mxu1 %v1228_v25 }
 0x1d2   : > { %v575_v34 = vpop.permute.xlu0 %574  ;;  %v579_v35 = vpop.permute.xlu1 %578  ;;  %1215 = vmatpush1.bf16.msra.mxu0 %v1214_v33 }
 0x1d3   : > { %1181 = vmatprep.subr.mxu1 %v579_v35  ;;  %v582_v38 = vsel %vm580_vm0, %v577_v28, %v579_v35  ;;  %v581_v40 = vsel %vm580_vm0, %v575_v34, %v577_v28 }
 0x1d4   : > { %643 = vmatprep.subr.mxu0 %v582_v38  ;;  %1182 = vmatpush3.msra.mxu1 %v579_v35 }
 0x1d5   : > { %1184 = vmatmul.mubr.msk.f32.vlgmr.msra.gmra.mrb[4].mxu1 %vm614_vm8, %v587_v36 }
 0x1d6   : > { %644 = vmatpush1.msra.mxu0 %v581_v40  ;;  %1186 = vmatprep.mubr.msk.f32.mxu1 %vm614_vm8, %v588_v39 }
 0x1d7   : > { %1127 = vmatmul.mubr.msk.f32.vlgmr.msra.gmra.mrb[0].mxu0 %vm614_vm8, %v1711_v37  ;;  %v1528_v37 = vmov 0.0|0.0  }
 0x1d8   : > { %697 = vmatprep.mubr.f32.mxu0 %v1517_v0  ;;  %1240 = vmatprep.subr.bf16.mxu0 %v1528_v37 }
 0x1d9   : > { %1187 = vmatmul.mubr.msk.f32.gmra.mrb[6].mxu1 %vm614_vm8, %v589_v41 }
 0x1da   : > { %936 = vmatprep.mubr.f32.mxu1 %v1517_v0 }
 0x1db   : > { %1128 = vmatmul.mubr.msk.f32.gmra.mrb[2].mxu0 %vm614_vm8, %v587_v36 }
 0x1dc   : > { %703 = vmatprep.mubr.f32.mxu0 %v1517_v0 }
 0x1df   : > { %1129 = vmatmul.mubr.msk.f32.gmra.mrb[4].mxu0 %vm614_vm8, %v588_v39 }
 0x1e0   : > { %709 = vmatprep.mubr.f32.mxu0 %v1517_v0 }
 0x1e3   : > { %1130 = vmatmul.mubr.msk.f32.gmra.mrb[6].mxu0 %vm614_vm8, %v589_v41  ;;  %v597_v42 = vpop.permute.xlu1 %596  ;;  %v602_v43 = vpop.permute.xlu0 %601 }
 0x1e4   : > { %1197 = vmatprep.mubr.msk.f32.mxu0 %vm1519_vm1, %v1517_v0  ;;  %vm868_vm1 = vcmask 261120  }
 0x1e7   : > { %v607_v50 = vpop.permute.xlu1 %606  ;;  %v612_v53 = vpop.permute.xlu0 %611 }
 0x2a8   : > { %v1185_v44 = vpop.f32.mrb[4].mxu1 }
 0x2a9   : > { %v788_v45 = vadd.f32 %v1185_v44, %v602_v43  ;;  %v782_v46 = vpop.f32.mrb[5].mxu1 }
 0x2aa   : > { %v783_v47 = vadd.f32 %v782_v46, %v597_v42  ;;  %v693_v48 = vpop.f32.mrb[0].mxu0 }
 0x2ab   : > { %v806_v49 = vmul.f32 0.5, %v788_v45  ;;  %v1769_v51 = vadd.f32 %v693_v48, %v597_v42  ;;  %v695_v52 = vpop.f32.mrb[1].mxu0 }
 0x2ac   : > { %v803_v54 = vmul.f32 0.5, %v783_v47  ;;  %v1771_v55 = vadd.f32 %v695_v52, %v597_v42  ;;  %v1188_v0 = vpop.f32.mrb[6].mxu1 }
 0x2ad   : > { %1361 = vtanh.f32 %v806_v49  ;;  %v801_v56 = vmul.f32 0.5, %v1769_v51  ;;  %v798_v57 = vadd.f32 %v1188_v0, %v612_v53  ;;  %v792_v58 = vpop.f32.mrb[7].mxu1 }
 0x2ae   : > { %1363 = vtanh.f32 %v803_v54  ;;  %v802_v59 = vmul.f32 0.5, %v1771_v55  ;;  %v793_v60 = vadd.f32 %v792_v58, %v607_v50  ;;  %v699_v61 = vpop.f32.mrb[2].mxu0 }
 0x2af   : > { %1365 = vtanh.f32 %v801_v56  ;;  %v812_v62 = vmul.f32 0.5, %v798_v57  ;;  %v700_v63 = vadd.f32 %v699_v61, %v602_v43  ;;  %v701_v1 = vpop.f32.mrb[3].mxu0 }
 0x2b0   : > { %1367 = vtanh.f32 %v802_v59  ;;  %v809_v2 = vmul.f32 0.5, %v793_v60  ;;  %v702_v3 = vadd.f32 %v701_v1, %v602_v43 }
 0x2b1   : > { %1369 = vtanh.f32 %v812_v62  ;;  %v804_v4 = vmul.f32 0.5, %v700_v63 }
 0x2b2   : > { %1371 = vtanh.f32 %v809_v2  ;;  %v805_v6 = vmul.f32 0.5, %v702_v3  ;;  %v705_v7 = vpop.f32.mrb[4].mxu0 }
 0x2b3   : > { %1373 = vtanh.f32 %v804_v4  ;;  %v1775_v8 = vadd.f32 %v705_v7, %v607_v50  ;;  %v707_v9 = vpop.f32.mrb[5].mxu0 }
 0x2b4   : > { %1375 = vtanh.f32 %v805_v6  ;;  %v1777_v10 = vadd.f32 %v707_v9, %v607_v50 }
 0x2b5   : > { %v807_v11 = vmul.f32 0.5, %v1775_v8 }
 0x2b6   : > { %v808_v14 = vmul.f32 0.5, %v1777_v10  ;;  %v711_v15 = vpop.f32.mrb[6].mxu0 }
 0x2b7   : > { %v1362_v16 = vpop.eup %1361  ;;  %1377 = vtanh.f32 %v807_v11  ;;  %v1781_v17 = vadd.f32 %v711_v15, %v612_v53  ;;  %v713_v18 = vpop.f32.mrb[7].mxu0 }
 0x2b8   : > { %v1364_v19 = vpop.eup %1363  ;;  %v830_v20 = vadd.f32 1.0, %v1362_v16  ;;  %1379 = vtanh.f32 %v808_v14  ;;  %v714_v21 = vadd.f32 %v713_v18, %v612_v53  ;;  %v866_v18 = vpop.permute.xlu1 %865 }
 0x2b9   : > { %v1366_v22 = vpop.eup %1365  ;;  %v827_v23 = vadd.f32 1.0, %v1364_v19  ;;  %v810_v24 = vmul.f32 0.5, %v1781_v17 }
 0x2ba   : > { %v1368_v25 = vpop.eup %1367  ;;  %v842_v26 = vmul.f32 0.5, %v830_v20  ;;  %v825_v27 = vadd.f32 1.0, %v1366_v22  ;;  %v811_v28 = vmul.f32 0.5, %v714_v21 }
 0x2bb   : > { %v1370_v29 = vpop.eup %1369  ;;  %v839_v30 = vmul.f32 0.5, %v827_v23  ;;  %v826_v31 = vadd.f32 1.0, %v1368_v25  ;;  %1381 = vtanh.f32 %v810_v24 }
 0x2bc   : > { %v1372_v32 = vpop.eup %1371  ;;  %v854_v33 = vmul.f32 %v842_v26, %v788_v45  ;;  %v836_v34 = vadd.f32 1.0, %v1370_v29  ;;  %1383 = vtanh.f32 %v811_v28  ;;  %v837_v40 = vmul.f32 0.5, %v825_v27 }
 0x2bd   : > { %v1374_v35 = vpop.eup %1373  ;;  %v851_v36 = vmul.f32 %v839_v30, %v783_v47  ;;  %v833_v38 = vadd.f32 1.0, %v1372_v32  ;;  %v838_v44 = vmul.f32 0.5, %v826_v31 }
 0x2be   : > { %v1376_v39 = vpop.eup %1375  ;;  %v848_v41 = vmul.f32 0.5, %v836_v34  ;;  %v828_v42 = vadd.f32 1.0, %v1374_v35  ;;  %v849_v0 = vmul.f32 %v837_v40, %v1769_v51 }
 0x2bf   : > { %v1241_v43 = vpack.c.bf16 %v854_v33, %v851_v36  ;;  %v845_v46 = vmul.f32 0.5, %v833_v38  ;;  %v829_v48 = vadd.f32 1.0, %v1376_v39  ;;  %v850_v58 = vmul.f32 %v838_v44, %v1771_v55 }
 0x2c0   : > { %v860_v49 = vmul.f32 %v848_v41, %v798_v57  ;;  %v840_v50 = vmul.f32 0.5, %v828_v42 }
 0x2c1   : > { %v1378_v52 = vpop.eup %1377  ;;  %v857_v53 = vmul.f32 %v845_v46, %v793_v60  ;;  %v841_v54 = vmul.f32 0.5, %v829_v48  ;;  %1242 = vmatpush3.bf16.msra.mxu0 %v1241_v43  ;;  %v861_v60 = vld [vmem:[%s1850_s5] sm:$0xff] }
 0x2c2   : > { %v1380_v45 = vpop.eup %1379  ;;  %v852_v56 = vmul.f32 %v840_v50, %v700_v63  ;;  %v831_v47 = vadd.f32 1.0, %v1378_v52  ;;  %1243 = vmatprep.subr.bf16.mxu0 %v1528_v37 }
 0x2c3   : > { %v1244_v59 = vpack.c.bf16 %v860_v49, %v857_v53  ;;  %v853_v61 = vmul.f32 %v841_v54, %v702_v3  ;;  %v832_v62 = vadd.f32 1.0, %v1380_v45 }
 0x2c4   : > { %v1234_v1 = vpack.c.bf16 %v852_v56, %v849_v0  ;;  %v843_v51 = vmul.f32 0.5, %v831_v47 }
 0x2c5   : > { %v1382_v2 = vpop.eup %1381  ;;  %1245 = vmatpush3.bf16.msra.mxu0 %v1244_v59  ;;  %v1232_v57 = vpack.c.bf16 %v853_v61, %v850_v58  ;;  %v844_v6 = vmul.f32 0.5, %v832_v62 }
 0x2c6   : > { %v1384_v4 = vpop.eup %1383  ;;  %v834_v63 = vadd.f32 1.0, %v1382_v2  ;;  %v855_v7 = vmul.f32 %v843_v51, %v1775_v8 }
 0x2c7   : > { %v835_v37 = vadd.f32 1.0, %v1384_v4  ;;  %1233 = vmatprep.subr.bf16.mxu1 %v1232_v57  ;;  %v856_v11 = vmul.f32 %v844_v6, %v1777_v10 }
 0x2c8   : > { %v846_v55 = vmul.f32 0.5, %v834_v63  ;;  %1235 = vmatpush1.bf16.msra.mxu1 %v1234_v1  ;;  %1198 = vmatmul.mubr.msk.f32.vlgmr.msra.gmra.mrb[8].mxu0 %vm868_vm1, %v861_v60 }
 0x2c9   : > { %v847_v3 = vmul.f32 0.5, %v835_v37 }
 0x2ca   : > { %v858_v9 = vmul.f32 %v846_v55, %v1781_v17 }
 0x2cb   : > { %v859_v14 = vmul.f32 %v847_v3, %v714_v21 }
 0x2cc   : > { %v1238_v15 = vpack.c.bf16 %v858_v9, %v855_v7 }
 0x2cd   : > { %v1236_v16 = vpack.c.bf16 %v859_v14, %v856_v11 }
 0x2cf   : > { %1237 = vmatprep.subr.bf16.mxu1 %v1236_v16 }
 0x2d0   : > { %1239 = vmatpush1.bf16.msra.mxu1 %v1238_v15 }
 0x2d3   : > { %1135 = vmatmul.mubr.msk.f32.vlgmr.msra.gmra.mrb[8].mxu1 %vm868_vm1, %v861_v60 }
 0x39b   : > { %v1009_v19 = vpop.f32.mrb[8].mxu0 }
 0x39c   : > { %v1010_v20 = vadd.f32 %v1009_v19, %v866_v18  ;;  %v1199_v22 = vpop.f32.mrb[9].mxu0 }
 0x39e   : > { %v1015_v8 = vadd.f32 %v1010_v20, %v1736_v5 }
 0x3a0   : > { %1019 = vst.msk [vmem:[%s299_s17 + $0x10] sm:$0xff] %vm1018_vm2, %v1015_v8 }
 0x3a6   : > { %v938_v10 = vpop.f32.mrb[8].mxu1 }
 0x3a7   : > { %v939_v17 = vadd.f32 %v938_v10, %v866_v18  ;;  %v940_v21 = vpop.f32.mrb[9].mxu1 }
 0x3a8   : > { %v941_v23 = vadd.f32 %v940_v21, %v866_v18 }
 0x3a9   : > { %v1013_v24 = vadd.f32 %v939_v17, %v1740_v12 }
 0x3aa   : > { %v1014_v25 = vadd.f32 %v941_v23, %v1744_v13 }
 0x3ab   : > { %1016 = vst [vmem:[%s299_s17] sm:$0xff] %v1013_v24 }
 0x3ac   : > { %1017 = vst [vmem:[%s299_s17 + $0x8] sm:$0xff] %v1014_v25 }
 0x3ad   : > { %1454 = shalt.err (!%p1451_p11)
}
 0x3ae   : > { %s1455_s14 = scalar_lea.hbm %s1803_s23, 384  ;;  %s1459_s13 = scalar_lea.hbm %s1852_s7, 768 }
 0x3af   : > { %p1456_p13 = scmp.ne.s32.totalorder %s1803_s23, %s1455_s14  ;;  %p1460_p5 = scmp.lt.u32.totalorder %s1803_s23, %s1852_s7 }
 0x3b0   : > { %p1461_p9 = scmp.lt.u32.totalorder %s1459_s13, %s1455_s14  ;;  %p1463_p12 = scmp.lt.u32.totalorder %s1455_s14, %s1803_s23 }
 0x3b1   : > { %p1457_p0 = pnand %p1456_p13, %p1865_p1 }
 0x3b2   : > { %p1462_p10 = por %p1461_p9, %p1460_p5 }
 0x3b3   : > { %p1458_p6 = pneg %p1457_p0 }
 0x3b4   : > { %p1464_p2 = por %p1463_p12, %p1462_p10 }
 0x3b6   : > { %p1465_p3 = pnand %p1464_p2, %p1458_p6 }
 0x3b8   : > { %1468 = shalt.err (!%p1465_p3)
}
 0x3b9   : > { %1257 = dma.vmem_to_hbm [thread:$0]  (%p1865_p1), %s1805_s20, 384, %s1803_s23, %s1021_s28  }
 0x3ba PF: > { %p1274_p4 = scmp.ge.s32.totalorder %s1511_s27, 2  ;;  %s1047_s21 = sand.u32 1, %s1499_s24  }
 0x3bb   : > { %p1866_p7 = scmp.ne.s32.totalorder %s1857_s12, 0  ;;  %s1048_s22 = scalar_lea.sflag [#allocation4], %s1047_s21 }
 0x3bd   : > { %p1267_p8 = pnand %p1274_p4, %p1866_p7 }
 0x3bf   : > { %1494 = dma.done.wait (!%p1267_p8), %s1048_s22, 384  }
 0x3c0   : > { %1496 = vsyncadd (!%p1267_p8), %s1048_s22, 4294966912  ;;  %p19_p11 = scmp.ge.s32.totalorder %s1595_s30, 4   ;;  %s1867_s24 = smov %s1503_s25 }
 0x3c1   : > { %s1868_s25 = smov %s1507_s26  ;;  %s1869_s26 = smov %s1606_s10 }
 0x3c2   : > { %s1870_s27 = smov %s1595_s30  ;;  %21 = sbr.rel (!%p19_p11) target bundleno = 5 (0x5), region = 92 }
 0x3c9   :  { %1053 = vsyncpa [#allocation3], 1 }
 0x3ca   :  { %1055 = vsyncpa [#allocation3 + $0x1], 1 }
 0x3cb   :  { %1056 = vsyncpa [#allocation6], 1 }
 0x3cc   :  { %1057 = vsyncpa [#allocation4], 1 }
 0x3cd   :  { %1059 = vsyncpa [#allocation4 + $0x1], 1 }

</bundles_post_ra>
